<compile_context>
chip_gen: v7x
topology: tpu7x:2x2x1
jax: 0.10.0
libtpu: 0.0.40
codegen_flags: <defaults>
</compile_context>

<pallas_src>
import functools

import jax
import jax.numpy as jnp
from jax.experimental import pallas as pl
from jax.experimental.pallas import tpu as pltpu

LANES = 128                        # vreg lane width
SUBLANES = 8                       # f32 sublane granularity
THW_CAP = 2048                     # max spatial tile width (lanes)
VMEM_A_BUDGET = 4 * 1024 * 1024    # soft cap for one A block (Pallas double-buffers it)


def _round_up(a, b):
    return ((a + b - 1) // b) * b


# ---------------- Pallas kernels ----------------

def _conv_stats_kernel(a_ref, w_ref, psum_ref, psq_ref):
    """Conv-as-matmul + per-tile BN partial statistics (y never leaves VMEM).

    a_ref:    (Kd, THW)      im2col columns for this (n, spatial-tile)
    w_ref:    (Cout_p, Kd)   weights (Cout padded to a sublane multiple of 8)
    psum_ref: (Cout_p, 128)  partial per-channel sum, folded over lane groups
    psq_ref:  (Cout_p, 128)  partial per-channel sum of squares
    """
    y = jnp.dot(w_ref[...], a_ref[...], preferred_element_type=jnp.float32)
    groups = y.shape[1] // LANES
    s = y[:, :LANES]
    q = s * s
    for g in range(1, groups):            # static unroll; 128-aligned lane slices
        blk = y[:, g * LANES:(g + 1) * LANES]
        s = s + blk                        # pure VALU vreg adds (XLU slot stays free)
        q = q + blk * blk
    psum_ref[...] = s
    psq_ref[...] = q


def _conv_bn_elu_kernel(a_ref, w_ref, scale_ref, shift_ref, o_ref):
    """Recompute the conv matmul, apply folded BN affine (one FMA), then ELU."""
    y = jnp.dot(w_ref[...], a_ref[...], preferred_element_type=jnp.float32)
    z = y * scale_ref[...] + shift_ref[...]        # (Cout_p,1) lane-broadcast FMA
    # NOTE: expm1 would be marginally nicer for tiny |z|, but exp(z)-1 has a
    # guaranteed Mosaic lowering and the absolute error is negligible here.
    o_ref[...] = jnp.where(z > 0.0, z, jnp.exp(z) - 1.0)


# ---------------- wrapper ----------------

def conv_bn_elu(x_nchw, weight, bias, gamma, beta, *, kernel_size, stride,
                eps=1e-5, compute_dtype=jnp.bfloat16):
    # The conv bias is exactly cancelled by training-mode BN mean subtraction,
    # so it is dead compute in this forward pass (kept for API compatibility
    # with the PyTorch module).
    del bias

    N, Cin, H, W = x_nchw.shape
    Cout = weight.shape[0]
    K = kernel_size
    pad = (K - 1) // 2
    Ho = (H + 2 * pad - K) // stride + 1
    Wo = (W + 2 * pad - K) // stride + 1
    HW = Ho * Wo
    M = N * HW
    Kd = K * K * Cin
    Cout_p = _round_up(Cout, SUBLANES)

    # ---- im2col, channel-major: (N, Kd, Ho*Wo), built straight from NCHW ----
    x = x_nchw.astype(compute_dtype)
    xp = jnp.pad(x, ((0, 0), (0, 0), (pad, pad), (pad, pad)))
    cols = []
    for kh in range(K):
        for kw in range(K):
            cols.append(xp[:, :, kh:kh + stride * (Ho - 1) + 1:stride,
                           kw:kw + stride * (Wo - 1) + 1:stride])
    A = jnp.stack(cols, axis=1).reshape(N, Kd, HW)      # (N, K*K*Cin, Ho*Wo)

    # Spatial tile: as wide as possible (lane-dense, fewer grid steps), capped so
    # the double-buffered A block stays well under scoped VMEM on all chips.
    max_by_vmem = VMEM_A_BUDGET // max(Kd * jnp.dtype(compute_dtype).itemsize, 1)
    max_by_vmem = max(LANES, (max_by_vmem // LANES) * LANES)
    THW = min(THW_CAP, max_by_vmem, _round_up(HW, LANES))
    T = -(-HW // THW)
    HWp = T * THW
    A = jnp.pad(A, ((0, 0), (0, 0), (0, HWp - HW)))     # zero cols -> zero y cols

    # Weights in matching Kd order (kh, kw, cin); Cout padded to sublane multiple.
    Wmat = jnp.transpose(weight, (0, 2, 3, 1)).reshape(Cout, Kd)
    Wmat = jnp.pad(Wmat, ((0, Cout_p - Cout), (0, 0))).astype(compute_dtype)

    grid = (N, T)
    parallel = pltpu.CompilerParams(dimension_semantics=("parallel", "parallel"))

    # ---- pass 1: conv matmul + fused BN partial statistics (y stays in VMEM) ----
    psum, psq = pl.pallas_call(
        _conv_stats_kernel,
        out_shape=(jax.ShapeDtypeStruct((N, Cout_p, T * LANES), jnp.float32),
                   jax.ShapeDtypeStruct((N, Cout_p, T * LANES), jnp.float32)),
        grid=grid,
        in_specs=[pl.BlockSpec((None, Kd, THW), lambda n, t: (n, 0, t)),
                  pl.BlockSpec((Cout_p, Kd), lambda n, t: (0, 0))],
        out_specs=(pl.BlockSpec((None, Cout_p, LANES), lambda n, t: (n, 0, t)),
                   pl.BlockSpec((None, Cout_p, LANES), lambda n, t: (n, 0, t))),
        compiler_params=parallel,
    )(A, Wmat)

    # ---- tiny XLA finish of the statistics (O(N*T*Cout) work) ----
    s = jnp.sum(psum, axis=(0, 2))
    q = jnp.sum(psq, axis=(0, 2))
    mean = s / M                                   # padded cols contribute exactly 0
    var = jnp.maximum(q / M - mean * mean, 0.0)    # biased var, clamped (cancellation)
    inv = jax.lax.rsqrt(var + eps)
    gamma_p = jnp.pad(gamma.astype(jnp.float32), (0, Cout_p - Cout))
    beta_p = jnp.pad(beta.astype(jnp.float32), (0, Cout_p - Cout))
    scale = (gamma_p * inv).reshape(Cout_p, 1)
    shift = (beta_p - mean * gamma_p * inv).reshape(Cout_p, 1)

    # ---- pass 2: recompute matmul, folded BN affine + ELU, lane-dense store ----
    out = pl.pallas_call(
        _conv_bn_elu_kernel,
        out_shape=jax.ShapeDtypeStruct((N, Cout_p, HWp), jnp.float32),
        grid=grid,
        in_specs=[pl.BlockSpec((None, Kd, THW), lambda n, t: (n, 0, t)),
                  pl.BlockSpec((Cout_p, Kd), lambda n, t: (0, 0)),
                  pl.BlockSpec((Cout_p, 1), lambda n, t: (0, 0)),
                  pl.BlockSpec((Cout_p, 1), lambda n, t: (0, 0))],
        out_specs=pl.BlockSpec((None, Cout_p, THW), lambda n, t: (n, 0, t)),
        compiler_params=parallel,
    )(A, Wmat, scale, shift)

    # Channel-major result is already NCHW; drop padding and reshape (no transpose).
    return out[:, :Cout, :HW].reshape(N, Cout, Ho, Wo)


# ---------------- reference (pure JAX) for a correctness check ----------------

def _reference(x, weight, bias, gamma, beta, K, stride, eps=1e-5):
    pad = (K - 1) // 2
    y = jax.lax.conv_general_dilated(
        x, weight, window_strides=(stride, stride),
        padding=((pad, pad), (pad, pad)),
        dimension_numbers=("NCHW", "OIHW", "NCHW"),
    ) + bias[None, :, None, None]
    mean = jnp.mean(y, axis=(0, 2, 3), keepdims=True)
    var = jnp.var(y, axis=(0, 2, 3), keepdims=True)
    z = (y - mean) / jnp.sqrt(var + eps) * gamma[None, :, None, None] \
        + beta[None, :, None, None]
    return jnp.where(z > 0, z, jnp.exp(z) - 1.0)


if __name__ == "__main__":
    # Module config: conv(num_in_layers=4, num_out_layers=8, kernel_size=3, stride=1)
    Cin, Cout, K, stride = 4, 8, 3, 1
    N, H, W = 2, 16, 16

    key = jax.random.PRNGKey(0)
    kx, kw, kb = jax.random.split(key, 3)
    x = jax.random.normal(kx, (N, Cin, H, W), dtype=jnp.float32)
    weight = 0.1 * jax.random.normal(kw, (Cout, Cin, K, K), dtype=jnp.float32)
    bias = 0.1 * jax.random.normal(kb, (Cout,), dtype=jnp.float32)
    gamma = jnp.ones((Cout,), dtype=jnp.float32)   # PyTorch BN init
    beta = jnp.zeros((Cout,), dtype=jnp.float32)   # PyTorch BN init

    ref = _reference(x, weight, bias, gamma, beta, K, stride)

    # Default path: bf16 A/W streams (stats, BN affine, ELU and output stay f32).
    run = jax.jit(functools.partial(conv_bn_elu, kernel_size=K, stride=stride))
    out = jax.block_until_ready(run(x, weight, bias, gamma, beta))
    assert out.shape == ref.shape == (N, Cout, H, W)
    assert float(jnp.max(jnp.abs(out - ref))) < 1e-1, "bf16 mismatch vs reference"

    # f32 path: matches the PyTorch module numerics tightly.
    run_f32 = jax.jit(functools.partial(conv_bn_elu, kernel_size=K, stride=stride,
                                        compute_dtype=jnp.float32))
    out_f32 = jax.block_until_ready(run_f32(x, weight, bias, gamma, beta))
    assert out_f32.shape == ref.shape
    assert float(jnp.max(jnp.abs(out_f32 - ref))) < 1e-3, "f32 mismatch vs reference"

    print("KERNEL_OK")
</pallas_src>

<mosaic_0001>
module attributes {stable_mosaic.version = 11 : i64} {
  func.func @_conv_stats_kernel(%arg0: i32, %arg1: i32, %arg2: memref<1x36x256xbf16, #tpu.memory_space<vmem>>, %arg3: memref<8x36xbf16, #tpu.memory_space<vmem>>, %arg4: memref<1x8x128xf32, #tpu.memory_space<vmem>>, %arg5: memref<1x8x128xf32, #tpu.memory_space<vmem>>) attributes {dimension_semantics = [#tpu.dimension_semantics<parallel>, #tpu.dimension_semantics<parallel>], iteration_bounds = array<i64: 2, 1>, scalar_prefetch = 0 : i64, scratch_operands = 0 : i64, tpu.core_type = #tpu.core_type<tc>, window_params = [{transform_indices = @transform_0, window_bounds = array<i64: 1, 36, 256>}, {pipeline_mode = #tpu.pipeline_mode<synchronous>, transform_indices = @transform_1, window_bounds = array<i64: 8, 36>}, {transform_indices = @transform_2, window_bounds = array<i64: 1, 8, 128>}, {transform_indices = @transform_3, window_bounds = array<i64: 1, 8, 128>}]} {
    %c0 = arith.constant 0 : index
    %c0_0 = arith.constant 0 : index
    %0 = vector.load %arg3[%c0, %c0_0] : memref<8x36xbf16, #tpu.memory_space<vmem>>, vector<8x36xbf16>
    %c0_1 = arith.constant 0 : index
    %c0_2 = arith.constant 0 : index
    %c0_3 = arith.constant 0 : index
    %1 = vector.load %arg2[%c0_1, %c0_2, %c0_3] : memref<1x36x256xbf16, #tpu.memory_space<vmem>>, vector<1x36x256xbf16>
    %2 = vector.shape_cast %1 : vector<1x36x256xbf16> to vector<36x256xbf16>
    %cst = arith.constant dense<0.000000e+00> : vector<8x256xf32>
    %3 = tpu.matmul %0, %2, %cst {dimension_numbers = #tpu.dot_dimension_numbers<[1], [0], [0], [1], [0, 0, 1, 1], [], []>} : vector<8x36xbf16>, vector<36x256xbf16>, vector<8x256xf32> -> vector<8x256xf32>
    %4 = vector.extract_strided_slice %3 {offsets = [0, 0], sizes = [8, 128], strides = [1, 1]} : vector<8x256xf32> to vector<8x128xf32>
    %5 = arith.mulf %4, %4 : vector<8x128xf32>
    %6 = vector.extract_strided_slice %3 {offsets = [0, 128], sizes = [8, 128], strides = [1, 1]} : vector<8x256xf32> to vector<8x128xf32>
    %7 = arith.addf %4, %6 : vector<8x128xf32>
    %8 = arith.mulf %6, %6 : vector<8x128xf32>
    %9 = arith.addf %5, %8 : vector<8x128xf32>
    %c0_4 = arith.constant 0 : index
    %c0_5 = arith.constant 0 : index
    %c0_6 = arith.constant 0 : index
    %10 = vector.load %arg4[%c0_4, %c0_5, %c0_6] : memref<1x8x128xf32, #tpu.memory_space<vmem>>, vector<1x8x128xf32>
    %11 = vector.shape_cast %10 : vector<1x8x128xf32> to vector<8x128xf32>
    %12 = vector.shape_cast %7 : vector<8x128xf32> to vector<1x8x128xf32>
    tpu.vector_store %arg4[%c0_4, %c0_5, %c0_6], %12 {strides = array<i32>} : memref<1x8x128xf32, #tpu.memory_space<vmem>>, vector<1x8x128xf32>,
    %c0_7 = arith.constant 0 : index
    %c0_8 = arith.constant 0 : index
    %c0_9 = arith.constant 0 : index
    %13 = vector.load %arg5[%c0_7, %c0_8, %c0_9] : memref<1x8x128xf32, #tpu.memory_space<vmem>>, vector<1x8x128xf32>
    %14 = vector.shape_cast %13 : vector<1x8x128xf32> to vector<8x128xf32>
    %15 = vector.shape_cast %9 : vector<8x128xf32> to vector<1x8x128xf32>
    tpu.vector_store %arg5[%c0_7, %c0_8, %c0_9], %15 {strides = array<i32>} : memref<1x8x128xf32, #tpu.memory_space<vmem>>, vector<1x8x128xf32>,
    return
  }
  func.func @transform_0(%arg0: i32, %arg1: i32) -> (i32, i32, i32) {
    %c0_i32 = arith.constant 0 : i32
    %c0_i32_0 = arith.constant 0 : i32
    return %arg0, %c0_i32, %arg1 : i32, i32, i32
  }
  func.func @transform_1(%arg0: i32, %arg1: i32) -> (i32, i32) {
    %c0_i32 = arith.constant 0 : i32
    %c0_i32_0 = arith.constant 0 : i32
    %c0_i32_1 = arith.constant 0 : i32
    return %c0_i32, %c0_i32_0 : i32, i32
  }
  func.func @transform_2(%arg0: i32, %arg1: i32) -> (i32, i32, i32) {
    %c0_i32 = arith.constant 0 : i32
    %c0_i32_0 = arith.constant 0 : i32
    return %arg0, %c0_i32, %arg1 : i32, i32, i32
  }
  func.func @transform_3(%arg0: i32, %arg1: i32) -> (i32, i32, i32) {
    %c0_i32 = arith.constant 0 : i32
    %c0_i32_0 = arith.constant 0 : i32
    return %arg0, %c0_i32, %arg1 : i32, i32, i32
  }
}

module attributes {stable_mosaic.version = 11 : i64} {
  func.func @_conv_bn_elu_kernel(%arg0: i32, %arg1: i32, %arg2: memref<1x36x256xbf16, #tpu.memory_space<vmem>>, %arg3: memref<8x36xbf16, #tpu.memory_space<vmem>>, %arg4: memref<8x1xf32, #tpu.memory_space<vmem>>, %arg5: memref<8x1xf32, #tpu.memory_space<vmem>>, %arg6: memref<1x8x256xf32, #tpu.memory_space<vmem>>) attributes {dimension_semantics = [#tpu.dimension_semantics<parallel>, #tpu.dimension_semantics<parallel>], iteration_bounds = array<i64: 2, 1>, scalar_prefetch = 0 : i64, scratch_operands = 0 : i64, tpu.core_type = #tpu.core_type<tc>, window_params = [{transform_indices = @transform_0, window_bounds = array<i64: 1, 36, 256>}, {pipeline_mode = #tpu.pipeline_mode<synchronous>, transform_indices = @transform_1, window_bounds = array<i64: 8, 36>}, {pipeline_mode = #tpu.pipeline_mode<synchronous>, transform_indices = @transform_2, window_bounds = array<i64: 8, 1>}, {pipeline_mode = #tpu.pipeline_mode<synchronous>, transform_indices = @transform_3, window_bounds = array<i64: 8, 1>}, {transform_indices = @transform_4, window_bounds = array<i64: 1, 8, 256>}]} {
    %c0 = arith.constant 0 : index
    %c0_0 = arith.constant 0 : index
    %0 = vector.load %arg3[%c0, %c0_0] : memref<8x36xbf16, #tpu.memory_space<vmem>>, vector<8x36xbf16>
    %c0_1 = arith.constant 0 : index
    %c0_2 = arith.constant 0 : index
    %c0_3 = arith.constant 0 : index
    %1 = vector.load %arg2[%c0_1, %c0_2, %c0_3] : memref<1x36x256xbf16, #tpu.memory_space<vmem>>, vector<1x36x256xbf16>
    %2 = vector.shape_cast %1 : vector<1x36x256xbf16> to vector<36x256xbf16>
    %cst = arith.constant dense<0.000000e+00> : vector<8x256xf32>
    %3 = tpu.matmul %0, %2, %cst {dimension_numbers = #tpu.dot_dimension_numbers<[1], [0], [0], [1], [0, 0, 1, 1], [], []>} : vector<8x36xbf16>, vector<36x256xbf16>, vector<8x256xf32> -> vector<8x256xf32>
    %c0_4 = arith.constant 0 : index
    %c0_5 = arith.constant 0 : index
    %4 = vector.load %arg4[%c0_4, %c0_5] : memref<8x1xf32, #tpu.memory_space<vmem>>, vector<8x1xf32>
    %5 = vector.broadcast %4 : vector<8x1xf32> to vector<8x256xf32>
    %6 = arith.mulf %3, %5 : vector<8x256xf32>
    %c0_6 = arith.constant 0 : index
    %c0_7 = arith.constant 0 : index
    %7 = vector.load %arg5[%c0_6, %c0_7] : memref<8x1xf32, #tpu.memory_space<vmem>>, vector<8x1xf32>
    %8 = vector.broadcast %7 : vector<8x1xf32> to vector<8x256xf32>
    %9 = arith.addf %6, %8 : vector<8x256xf32>
    %cst_8 = arith.constant 0.000000e+00 : f32
    %10 = vector.broadcast %cst_8 : f32 to vector<8x256xf32>
    %11 = arith.cmpf ogt, %9, %10 : vector<8x256xf32>
    %12 = math.exp %9 : vector<8x256xf32>
    %cst_9 = arith.constant 1.000000e+00 : f32
    %13 = vector.broadcast %cst_9 : f32 to vector<8x256xf32>
    %14 = arith.subf %12, %13 : vector<8x256xf32>
    %15 = arith.select %11, %9, %14 : vector<8x256xi1>, vector<8x256xf32>
    %c0_10 = arith.constant 0 : index
    %c0_11 = arith.constant 0 : index
    %c0_12 = arith.constant 0 : index
    %16 = vector.load %arg6[%c0_10, %c0_11, %c0_12] : memref<1x8x256xf32, #tpu.memory_space<vmem>>, vector<1x8x256xf32>
    %17 = vector.shape_cast %16 : vector<1x8x256xf32> to vector<8x256xf32>
    %18 = vector.shape_cast %15 : vector<8x256xf32> to vector<1x8x256xf32>
    tpu.vector_store %arg6[%c0_10, %c0_11, %c0_12], %18 {strides = array<i32>} : memref<1x8x256xf32, #tpu.memory_space<vmem>>, vector<1x8x256xf32>,
    return
  }
  func.func @transform_0(%arg0: i32, %arg1: i32) -> (i32, i32, i32) {
    %c0_i32 = arith.constant 0 : i32
    %c0_i32_0 = arith.constant 0 : i32
    return %arg0, %c0_i32, %arg1 : i32, i32, i32
  }
  func.func @transform_1(%arg0: i32, %arg1: i32) -> (i32, i32) {
    %c0_i32 = arith.constant 0 : i32
    %c0_i32_0 = arith.constant 0 : i32
    %c0_i32_1 = arith.constant 0 : i32
    return %c0_i32, %c0_i32_0 : i32, i32
  }
  func.func @transform_2(%arg0: i32, %arg1: i32) -> (i32, i32) {
    %c0_i32 = arith.constant 0 : i32
    %c0_i32_0 = arith.constant 0 : i32
    %c0_i32_1 = arith.constant 0 : i32
    return %c0_i32, %c0_i32_0 : i32, i32
  }
  func.func @transform_3(%arg0: i32, %arg1: i32) -> (i32, i32) {
    %c0_i32 = arith.constant 0 : i32
    %c0_i32_0 = arith.constant 0 : i32
    %c0_i32_1 = arith.constant 0 : i32
    return %c0_i32, %c0_i32_0 : i32, i32
  }
  func.func @transform_4(%arg0: i32, %arg1: i32) -> (i32, i32, i32) {
    %c0_i32 = arith.constant 0 : i32
    %c0_i32_0 = arith.constant 0 : i32
    return %arg0, %c0_i32, %arg1 : i32, i32, i32
  }
}

</mosaic_0001>

<bundles_post_ra>
// kernel: conv_bn_elu.2
= control target key start
LH: loop header
LB: loop body
LE: loop exit
PB: predicated region body
PF: predicated region fallthrough
CT: control target
= control target key end

     0   :  { %s529_s12 = smov 0   ;;  %s531_s13 = smov 0   ;;  %s572_s0 = inlined_call_operand.vmem [shape: bf16[2,36,256], index: 0, kind: input, shape index: {}]   ;;  %s573_s1 = inlined_call_operand.vmem [shape: bf16[8,36], index: 1, kind: input, shape index: {}]   ;;  %s574_s2 = inlined_call_operand.vmem [shape: f32[2,8,128], index: 2, kind: output, shape index: {0}]   ;;  %s575_s3 = inlined_call_operand.vmem [shape: f32[2,8,128], index: 3, kind: output, shape index: {1}]  }
   0x1   :  { %s533_s14 = smov 0  }
   0x2 LB: > { %s26_s15 = sadd.s32 1, %s502_s13  ;;  %p436_p0 = scmp.ge.s32.totalorder %s506_s14, 1  ;;  %s506_s14 = sphi %s533_s14, %s14_s14   ;;  %s502_s13 = sphi %s531_s13, %s577_s13   ;;  %s498_s12 = sphi %s529_s12, %s576_s12  }
   0x3   : > { %p28_p1 = scmp.ge.s32.totalorder %s26_s15, 2  ;;  %p163_p2 = scmp.lt.s32.totalorder %s506_s14, 3 }
   0x5   : > { %s579_s15 = smov (%p28_p1, %s26_s15), 0  ;;  %p164_p3 = pnand %p436_p0, %p163_p2 }
   0x6   : > { %p201_p4 = scmp.lt.s32.totalorder (!%p164_p3), %s498_s12, 1  ;;  %v508_v0 = vmov (!%p164_p3), 0   ;;  %vm260_vm0 = vcmask (!%p164_p3), 1041408   ;;  %v225_v9 = vld [vmem:[%s573_s1] sm:$0xf] (!%p164_p3)  ;;  %vm256_vm1 = vcmask (!%p164_p3), 293888  }
   0x7   : > { %167 = sbr.rel (%p164_p3) target bundleno = 249 (0xf9), region = 28  ;;  %299 = vmatprep.mubr.bf16.mxu0 (!%p164_p3), %v508_v0 }
   0xe   : > { %s581_s12 = smov (!%p201_p4, %s498_s12), 1 }
   0xf   : > { %s450_s16 = smul.u32 40, %s581_s12  ;;  %s438_s22 = sshll.u32 %s581_s12, 3 }
  0x10   : > { %s216_s25 = scalar_lea.vmem %s574_s2, %s438_s22  ;;  %s223_s28 = scalar_lea.vmem %s575_s3, %s438_s22 }
  0x11   : > { %s208_s19 = scalar_lea.vmem %s572_s0, %s450_s16 }
  0x12   : > { %v476_v1 = vld [vmem:[%s208_s19 + $0x4] ss:$8 sps:$4 sm:$0xff]   ;;  %v478_v2 = vld [vmem:[%s208_s19] ss:$8 sps:$4 sm:$0xff]   ;;  %v479_v3 = vld [vmem:[%s208_s19 + $0x14] ss:$8 sps:$4 sm:$0xff]  }
  0x13   : > { %267 = vmatprep.subr.bf16.mxu0 %v476_v1  ;;  %v230_v4 = vld [vmem:[%s208_s19 + $0x20] sm:$0x33]  ;;  %v481_v5 = vld [vmem:[%s208_s19 + $0x10] ss:$8 sps:$4 sm:$0xff]  }
  0x14   : > { %268 = vmatpush1.bf16.msra.mxu0 %v478_v2  ;;  %v445_v6 = vcombine.high %v230_v4, %v230_v4  ;;  %v444_v7 = vcombine.low %v230_v4, %v230_v4 }
  0x15   : > { %269 = vmatprep.subr.bf16.mxu0 %v479_v3 }
  0x16   : > { %v262_v8 = vsel %vm260_vm0, %v444_v7, 0 }
  0x18   : > { %270 = vmatpush1.bf16.msra.mxu0 %v481_v5 }
  0x19   : > { %446 = vmatprep.subr.msk.bf16.mxu0 %vm260_vm0, %v445_v6 }
  0x1c   : > { %272 = vmatpush1.bf16.msra.mxu0 %v262_v8 }
  0x1f   : > { %447 = vmatmul.mubr.msk.bf16.vlgmr.msra.gmra.mrb[0].mxu0 %vm256_vm1, %v225_v9 }
  0xf2   : > { %v301_v10 = vpop.f32.mrb[0].mxu0 }
  0xf3   : > { %v308_v11 = vmul.f32 %v301_v10, %v301_v10  ;;  %v303_v12 = vpop.f32.mrb[1].mxu0 }
  0xf4   : > { %v309_v13 = vadd.f32 %v303_v12, %v301_v10  ;;  %v310_v14 = vmul.f32 %v303_v12, %v303_v12  ;;  %v305_v15 = vpop.f32.mrb[2].mxu0 }
  0xf5   : > { %v306_v16 = vpop.f32.mrb[3].mxu0 }
  0xf6   : > { %v311_v17 = vadd.f32 %v310_v14, %v308_v11  ;;  %312 = vst [vmem:[%s216_s25] sm:$0xff] %v309_v13 }
  0xf8   : > { %313 = vst [vmem:[%s223_s28] sm:$0xff] %v311_v17 }
  0xf9 PF: > { %s14_s14 = sadd.s32 1, %s506_s14   ;;  %s576_s12 = smov %s502_s13 }
  0xfa   : > { %p11_p5 = scmp.ge.s32.totalorder %s14_s14, 4   ;;  %s577_s13 = smov %s579_s15 }
  0xfc   :  { %13 = sbr.rel (!%p11_p5) target bundleno = 2 (0x2), region = 70 }

// kernel: conv_bn_elu.3
= control target key start
LH: loop header
LB: loop body
LE: loop exit
PB: predicated region body
PF: predicated region fallthrough
CT: control target
= control target key end

     0   :  { %s546_s15 = smov 0   ;;  %s548_s16 = smov 0   ;;  %s592_s0 = inlined_call_operand.vmem [shape: bf16[2,36,256], index: 0, kind: input, shape index: {}]   ;;  %s593_s1 = inlined_call_operand.vmem [shape: bf16[8,36], index: 1, kind: input, shape index: {}]   ;;  %s594_s2 = inlined_call_operand.vmem [shape: f32[8,1], index: 2, kind: input, shape index: {}]   ;;  %s595_s3 = inlined_call_operand.vmem [shape: f32[8,1], index: 3, kind: input, shape index: {}]   ;;  %s596_s4 = inlined_call_operand.vmem [shape: f32[2,8,256], index: 4, kind: output, shape index: {}]  }
   0x1   :  { %s550_s17 = smov 0  }
   0x2 LB: > { %s26_s18 = sadd.s32 1, %s514_s16  ;;  %p440_p0 = scmp.ge.s32.totalorder %s518_s17, 1  ;;  %s518_s17 = sphi %s550_s17, %s14_s17   ;;  %s514_s16 = sphi %s548_s16, %s598_s16   ;;  %s510_s15 = sphi %s546_s15, %s597_s15  }
   0x3   : > { %p28_p1 = scmp.ge.s32.totalorder %s26_s18, 2  ;;  %p183_p2 = scmp.lt.s32.totalorder %s518_s17, 3 }
   0x5   : > { %s600_s18 = smov (%p28_p1, %s26_s18), 0  ;;  %p184_p3 = pnand %p440_p0, %p183_p2 }
   0x6   : > { %p218_p4 = scmp.lt.s32.totalorder (!%p184_p3), %s510_s15, 1  ;;  %v520_v0 = vmov (!%p184_p3), 0   ;;  %v321_v1 = vld [vmem:[%s594_s2] sm:$0xff] (!%p184_p3)  ;;  %vm273_vm0 = vcmask (!%p184_p3), 1041408   ;;  %vm269_vm1 = vcmask (!%p184_p3), 293888  }
   0x7   : > { %187 = sbr.rel (%p184_p3) target bundleno = 265 (0x109), region = 36  ;;  %312 = vmatprep.mubr.bf16.mxu0 (!%p184_p3), %v520_v0  ;;  %483 = vset.pattern.permute.xlu0 (!%p184_p3), %v520_v0  ;;  %v329_v2 = vld [vmem:[%s595_s3] sm:$0xff] (!%p184_p3) }
   0x8   : > { %324 = vperm.xlu0 (!%p184_p3), %483, %v321_v1   ;;  %v238_v11 = vld [vmem:[%s593_s1] sm:$0xf] (!%p184_p3) }
   0xc   : > { %332 = vperm.xlu0 (!%p184_p3), %483, %v329_v2  }
   0xe   : > { %s602_s15 = smov (!%p218_p4, %s510_s15), 1 }
   0xf   : > { %s457_s23 = smul.u32 40, %s602_s15  ;;  %s456_s29 = sshll.u32 %s602_s15, 4 }
  0x10   : > { %s235_s6 = scalar_lea.vmem %s596_s4, %s456_s29 }
  0x11   : > { %s225_s26 = scalar_lea.vmem %s592_s0, %s457_s23 }
  0x12   : > { %v484_v3 = vld [vmem:[%s225_s26 + $0x4] ss:$8 sps:$4 sm:$0xff]   ;;  %v486_v4 = vld [vmem:[%s225_s26] ss:$8 sps:$4 sm:$0xff]   ;;  %v487_v5 = vld [vmem:[%s225_s26 + $0x14] ss:$8 sps:$4 sm:$0xff]  }
  0x13   : > { %280 = vmatprep.subr.bf16.mxu0 %v484_v3  ;;  %v243_v6 = vld [vmem:[%s225_s26 + $0x20] sm:$0x33]  ;;  %v489_v7 = vld [vmem:[%s225_s26 + $0x10] ss:$8 sps:$4 sm:$0xff]  }
  0x14   : > { %281 = vmatpush1.bf16.msra.mxu0 %v486_v4  ;;  %v449_v8 = vcombine.high %v243_v6, %v243_v6  ;;  %v448_v9 = vcombine.low %v243_v6, %v243_v6 }
  0x15   : > { %282 = vmatprep.subr.bf16.mxu0 %v487_v5 }
  0x16   : > { %v275_v10 = vsel %vm273_vm0, %v448_v9, 0 }
  0x18   : > { %283 = vmatpush1.bf16.msra.mxu0 %v489_v7 }
  0x19   : > { %450 = vmatprep.subr.msk.bf16.mxu0 %vm273_vm0, %v449_v8 }
  0x1c   : > { %285 = vmatpush1.bf16.msra.mxu0 %v275_v10 }
  0x1f   : > { %451 = vmatmul.mubr.msk.bf16.vlgmr.msra.gmra.mrb[0].mxu0 %vm269_vm1, %v238_v11 }
  0x87   : > { %v325_v12 = vpop.permute.xlu0 %324 }
  0x8b   : > { %v333_v16 = vpop.permute.xlu0 %332 }
  0xf2   : > { %v314_v13 = vpop.f32.mrb[0].mxu0 }
  0xf3   : > { %v327_v14 = vmul.f32 %v325_v12, %v314_v13  ;;  %v316_v15 = vpop.f32.mrb[1].mxu0 }
  0xf4   : > { %v328_v17 = vmul.f32 %v325_v12, %v316_v15  ;;  %v318_v18 = vpop.f32.mrb[2].mxu0 }
  0xf5   : > { %v335_v19 = vadd.f32 %v333_v16, %v327_v14  ;;  %v319_v20 = vpop.f32.mrb[3].mxu0 }
  0xf6   : > { %v336_v21 = vadd.f32 %v333_v16, %v328_v17 }
  0xf7   : > { %v339_v22 = vmul.f32 1.442695, %v335_v19  ;;  %vm337_vm2 = vcmp.gt.f32.partialorder %v335_v19, 0.0 }
  0xf8   : > { %v341_v23 = vmul.f32 1.442695, %v336_v21  ;;  %vm338_vm3 = vcmp.gt.f32.partialorder %v336_v21, 0.0 }
  0xf9   : > { %492 = vpow2.f32 %v339_v22 }
  0xfa   : > { %494 = vpow2.f32 %v341_v23 }
 0x103   : > { %v493_v24 = vpop.eup %492 }
 0x104   : > { %v495_v25 = vpop.eup %494  ;;  %v452_v26 = vadd.f32 -1.0, %v493_v24 }
 0x105   : > { %v453_v27 = vadd.f32 -1.0, %v495_v25 }
 0x106   : > { %v345_v28 = vsel %vm337_vm2, %v335_v19, %v452_v26 }
 0x107   : > { %347 = vst [vmem:[%s235_s6] sm:$0xff] %v345_v28  ;;  %v346_v29 = vsel %vm338_vm3, %v336_v21, %v453_v27 }
 0x108   : > { %348 = vst [vmem:[%s235_s6 + $0x8] sm:$0xff] %v346_v29 }
 0x109 PF: > { %s14_s17 = sadd.s32 1, %s518_s17   ;;  %s597_s15 = smov %s514_s16 }
 0x10a   : > { %p11_p5 = scmp.ge.s32.totalorder %s14_s17, 4   ;;  %s598_s16 = smov %s600_s18 }
 0x10c   :  { %13 = sbr.rel (!%p11_p5) target bundleno = 2 (0x2), region = 66 }

</bundles_post_ra>
